<compile_context>
chip_gen: v5e
topology: v5e:2x2
jax: 0.10.0
libtpu: 0.0.40
codegen_flags: <defaults>
</compile_context>

<pallas_src>
import numpy as np
import jax
import jax.numpy as jnp
from jax.experimental import pallas as pl
from jax.experimental.pallas import tpu as pltpu

BERT_DIM = 768
INTER_DIM = 20
MAX_PARAM = 5
MIN_PARAM = 1

N_LIVE_COLS = 5 + 4 + 3 + 2 + 1          # 15 live output columns (all stages)
OUT_PAD = 16                             # pad to 16 lanes (full-dim out block)
# column offset of each cascade stage inside the fused output
STAGE_COL_OFFSET = {5: 0, 4: 5, 3: 9, 2: 12, 1: 14}

HALF_PI = float(np.pi / 2.0)


# ----------------------------------------------------------------------------
# Pallas kernel: one fused matmul + bias + tanh*pi/2 per M tile.
# ----------------------------------------------------------------------------
def dressed_kernel(x_ref, w_ref, b_ref, o_ref):
    # x: [TM, 768] bf16   w: [768, 16] bf16   b: [1, 16] f32   o: [TM, 16] f32
    acc = jnp.dot(x_ref[...], w_ref[...], preferred_element_type=jnp.float32)
    o_ref[...] = jnp.tanh(acc + b_ref[...]) * jnp.float32(HALF_PI)


def pick_tile_m(num_words, max_tile=1024):
    """Pick a bandwidth-friendly M tile.

    Large tiles (up to 1024 rows) amortize the ~0.35us/step pipeline overhead;
    aiming for >= ~4 grid steps lets v7x's two TensorCores share the "parallel"
    axis; multiples of 16 match bf16 (16,128) sublane packing.
    """
    quarter = pl.cdiv(num_words, 4)
    tile = -(-quarter // 16) * 16          # round up to a multiple of 16
    return int(max(16, min(max_tile, tile)))


def run_dressed_kernel(x_bf16, w_fused, b_fused, *, tile_m=None):
    """x_bf16: [num_words, 768] bf16, w_fused: [768, 16] bf16, b_fused: [1,16] f32.

    Returns fused stage outputs [num_words, 16] f32 (15 live columns).
    """
    num_words = x_bf16.shape[0]
    if tile_m is None:
        tile_m = pick_tile_m(num_words)
    assert tile_m % 16 == 0, "tile_m must be a multiple of 16 (bf16 sublane packing)"

    grid = (pl.cdiv(num_words, tile_m),)   # ragged tail block masked by Pallas

    cost = pl.CostEstimate(
        flops=2 * num_words * BERT_DIM * OUT_PAD,
        transcendentals=num_words * OUT_PAD,
        bytes_accessed=(num_words * BERT_DIM * 2          # x read (bf16)
                        + BERT_DIM * OUT_PAD * 2          # weight (bf16)
                        + OUT_PAD * 4                     # bias (f32)
                        + num_words * OUT_PAD * 4),       # output (f32)
    )

    out = pl.pallas_call(
        dressed_kernel,
        out_shape=jax.ShapeDtypeStruct((num_words, OUT_PAD), jnp.float32),
        grid=grid,
        in_specs=[
            # x tile streamed per grid step (HBM-bandwidth bound operand).
            # If profiling on v6e at tile_m>=512 shows exposed DMA, add
            # pipeline_mode=pl.Buffered(3) here only.
            pl.BlockSpec((tile_m, BERT_DIM), lambda i: (i, 0)),
            # weight / bias: constant index_map -> VMEM-resident, DMA'd once.
            pl.BlockSpec((BERT_DIM, OUT_PAD), lambda i: (0, 0)),
            pl.BlockSpec((1, OUT_PAD), lambda i: (0, 0)),
        ],
        out_specs=pl.BlockSpec((tile_m, OUT_PAD), lambda i: (i, 0)),
        compiler_params=pltpu.CompilerParams(
            dimension_semantics=("parallel",)),
        cost_estimate=cost,
    )(x_bf16, w_fused, b_fused)
    return out


# ----------------------------------------------------------------------------
# Offline parameter composition (host side, f32).
# ----------------------------------------------------------------------------
def make_linear(key, in_f, out_f):
    """Deterministic PyTorch-Linear-style uniform init, W stored as [in, out]."""
    bound = 1.0 / np.sqrt(in_f)
    kw, kb = jax.random.split(key)
    w = jax.random.uniform(kw, (in_f, out_f), jnp.float32, -bound, bound)
    b = jax.random.uniform(kb, (out_f,), jnp.float32, -bound, bound)
    return w, b


def compose_cascade(params):
    """Fold pre_net + pre_net_max_params + cascade into one [768, 16] matrix.

    Column blocks [0:5], [5:9], [9:12], [12:14], [14:15] correspond to the
    output a word sees when it needs 5, 4, 3, 2, 1 quantum parameters.
    Returns (w_fused bf16 [768,16], b_fused f32 [1,16]).
    """
    (w0, b0), (w1, b1) = params[0], params[1]
    cascade = params[2:]                     # (5->4), (4->3), (3->2), (2->1)

    stage_ws, stage_bs = [w1], [b1]          # stage 5 = just pre_net_max_params
    for (wk, bk) in cascade:
        stage_ws.append(stage_ws[-1] @ wk)   # compose next cascade layer
        stage_bs.append(stage_bs[-1] @ wk + bk)

    # Fold pre_net (w0, b0) in:  (x@w0+b0)@Ws+bs == x@(w0@Ws) + (b0@Ws + bs)
    w_cols = [w0 @ ws for ws in stage_ws]                        # [768, k] each
    b_cols = [b0 @ ws + bs for ws, bs in zip(stage_ws, stage_bs)]
    w_all = jnp.concatenate(w_cols, axis=1)                      # [768, 15]
    b_all = jnp.concatenate(b_cols)                              # [15]

    w_fused = jnp.zeros((BERT_DIM, OUT_PAD), jnp.float32).at[:, :N_LIVE_COLS].set(w_all)
    b_fused = jnp.zeros((1, OUT_PAD), jnp.float32).at[0, :N_LIVE_COLS].set(b_all)
    return w_fused.astype(jnp.bfloat16), b_fused


def gather_qparams(fused_np, n_q_params_per_word):
    """Host-side ragged gather: word i with n params reads its stage's n columns."""
    # TODO(synk): optionally move this ragged gather on-device via
    # PrefetchScalarGridSpec (per-word stage offset + count in SMEM) so only
    # sum(n_i) floats are transferred; latency-only win for small num_words.
    pieces = []
    for i, n in enumerate(n_q_params_per_word):
        n = int(n)
        off = STAGE_COL_OFFSET[n]
        pieces.append(fused_np[i, off:off + n])
    return np.concatenate(pieces).astype(np.float32)


def dressed_quantum_net_forward(embeddings, n_q_params_per_word, params, *, tile_m=None):
    """Reproduces DressedQuantumNet.forward up to `self.qparams` (numpy array)."""
    w_fused, b_fused = compose_cascade(params)
    x_bf16 = embeddings.astype(jnp.bfloat16)   # single upstream cast; bf16 in HBM
    fused = run_dressed_kernel(x_bf16, w_fused, b_fused, tile_m=tile_m)
    fused = jax.block_until_ready(fused)
    qparams = gather_qparams(np.asarray(fused), n_q_params_per_word)
    # TODO(synk): the pytket circuit symbol substitution + AerBackend sampling
    # (Measure_s_qubits / get_norm_circuit_output / calculate_bitstring) is a
    # quantum-simulator call with no Pallas equivalent; `qparams` is exactly
    # what feeds the circuit in the original module.
    return qparams


# ----------------------------------------------------------------------------
# Pure-numpy reference of the same dense cascade (original per-word order).
# ----------------------------------------------------------------------------
def reference_forward(embeddings, n_q_params_per_word, params):
    (w0, b0), (w1, b1) = params[0], params[1]
    cascade = params[2:]
    out = []
    for i, n in enumerate(n_q_params_per_word):
        v = embeddings[i] @ w0 + b0
        v = v @ w1 + b1
        for (w, b) in cascade:
            if n <= w.shape[1]:
                v = v @ w + b
        out.append(np.tanh(v) * (np.pi / 2.0))
    return np.concatenate(out).astype(np.float32)


if __name__ == "__main__":
    key = jax.random.PRNGKey(0)
    k_emb, k0, k1, k2, k3, k4, k5 = jax.random.split(key, 7)

    # Small multi-tile demo: 56 words -> auto tile_m=16, grid of 4 steps with a
    # masked ragged tail (56 = 3*16 + 8); exercises the no-pad path.
    num_words = 56
    n_q_params_per_word = [(i % MAX_PARAM) + 1 for i in range(num_words)]
    embeddings = jax.random.normal(k_emb, (num_words, BERT_DIM), jnp.float32)

    params = [
        make_linear(k0, BERT_DIM, INTER_DIM),    # pre_net            768 -> 20
        make_linear(k1, INTER_DIM, MAX_PARAM),   # pre_net_max_params  20 -> 5
        make_linear(k2, 5, 4),                   # cascade 5 -> 4
        make_linear(k3, 4, 3),                   # cascade 4 -> 3
        make_linear(k4, 3, 2),                   # cascade 3 -> 2
        make_linear(k5, 2, 1),                   # cascade 2 -> 1
    ]

    qparams = jax.block_until_ready(
        dressed_quantum_net_forward(embeddings, n_q_params_per_word, params))

    ref = reference_forward(
        np.asarray(embeddings), n_q_params_per_word,
        [(np.asarray(w), np.asarray(b)) for w, b in params])

    # bf16 x / bf16 weights in the MXU => loosened tolerance vs f32 reference.
    np.testing.assert_allclose(np.asarray(qparams), ref, rtol=3e-2, atol=3e-2)

    print("KERNEL_OK")
</pallas_src>

<mosaic_0001>
module attributes {stable_mosaic.version = 11 : i64} {
  func.func @dressed_kernel(%arg0: i32, %arg1: memref<16x768xbf16, #tpu.memory_space<vmem>>, %arg2: memref<768x16xbf16, #tpu.memory_space<vmem>>, %arg3: memref<1x16xf32, #tpu.memory_space<vmem>>, %arg4: memref<16x16xf32, #tpu.memory_space<vmem>>) attributes {dimension_semantics = [#tpu.dimension_semantics<parallel>], iteration_bounds = array<i64: 4>, scalar_prefetch = 0 : i64, scratch_operands = 0 : i64, tpu.core_type = #tpu.core_type<tc>, window_params = [{transform_indices = @transform_0, window_bounds = array<i64: 16, 768>}, {pipeline_mode = #tpu.pipeline_mode<synchronous>, transform_indices = @transform_1, window_bounds = array<i64: 768, 16>}, {pipeline_mode = #tpu.pipeline_mode<synchronous>, transform_indices = @transform_2, window_bounds = array<i64: 1, 16>}, {transform_indices = @transform_3, window_bounds = array<i64: 16, 16>}]} {
    %c0 = arith.constant 0 : index
    %c0_0 = arith.constant 0 : index
    %0 = vector.load %arg1[%c0, %c0_0] : memref<16x768xbf16, #tpu.memory_space<vmem>>, vector<16x768xbf16>
    %c0_1 = arith.constant 0 : index
    %c0_2 = arith.constant 0 : index
    %1 = vector.load %arg2[%c0_1, %c0_2] : memref<768x16xbf16, #tpu.memory_space<vmem>>, vector<768x16xbf16>
    %cst = arith.constant dense<0.000000e+00> : vector<16x16xf32>
    %2 = tpu.matmul %0, %1, %cst {dimension_numbers = #tpu.dot_dimension_numbers<[1], [0], [0], [1], [0, 0, 1, 1], [], []>} : vector<16x768xbf16>, vector<768x16xbf16>, vector<16x16xf32> -> vector<16x16xf32>
    %c0_3 = arith.constant 0 : index
    %c0_4 = arith.constant 0 : index
    %3 = vector.load %arg3[%c0_3, %c0_4] : memref<1x16xf32, #tpu.memory_space<vmem>>, vector<1x16xf32>
    %4 = vector.broadcast %3 : vector<1x16xf32> to vector<16x16xf32>
    %5 = arith.addf %2, %4 : vector<16x16xf32>
    %6 = math.tanh %5 : vector<16x16xf32>
    %cst_5 = arith.constant 1.57079637 : f32
    %7 = vector.broadcast %cst_5 : f32 to vector<16x16xf32>
    %8 = arith.mulf %6, %7 : vector<16x16xf32>
    %c0_6 = arith.constant 0 : index
    %c0_7 = arith.constant 0 : index
    %9 = vector.load %arg4[%c0_6, %c0_7] : memref<16x16xf32, #tpu.memory_space<vmem>>, vector<16x16xf32>
    tpu.vector_store %arg4[%c0_6, %c0_7], %8 {strides = array<i32>} : memref<16x16xf32, #tpu.memory_space<vmem>>, vector<16x16xf32>,
    return
  }
  func.func @transform_0(%arg0: i32) -> (i32, i32) {
    %c0_i32 = arith.constant 0 : i32
    %c0_i32_0 = arith.constant 0 : i32
    return %arg0, %c0_i32 : i32, i32
  }
  func.func @transform_1(%arg0: i32) -> (i32, i32) {
    %c0_i32 = arith.constant 0 : i32
    %c0_i32_0 = arith.constant 0 : i32
    %c0_i32_1 = arith.constant 0 : i32
    return %c0_i32, %c0_i32_0 : i32, i32
  }
  func.func @transform_2(%arg0: i32) -> (i32, i32) {
    %c0_i32 = arith.constant 0 : i32
    %c0_i32_0 = arith.constant 0 : i32
    %c0_i32_1 = arith.constant 0 : i32
    return %c0_i32, %c0_i32_0 : i32, i32
  }
  func.func @transform_3(%arg0: i32) -> (i32, i32) {
    %c0_i32 = arith.constant 0 : i32
    %c0_i32_0 = arith.constant 0 : i32
    return %arg0, %c0_i32 : i32, i32
  }
}

</mosaic_0001>

<bundles_post_ra>
// kernel: tpu_custom_call.1
= control target key start
LH: loop header
LB: loop body
LE: loop exit
PB: predicated region body
PF: predicated region fallthrough
CT: control target
= control target key end

     0   :  { %s1434_s12 = smov 0   ;;  %s1436_s13 = smov 0   ;;  %s1678_s0 = inlined_call_operand.vmem [shape: bf16[56,768], index: 0, kind: input, shape index: {}]   ;;  %s1679_s1 = inlined_call_operand.vmem [shape: bf16[768,16], index: 1, kind: input, shape index: {}]   ;;  %s1680_s2 = inlined_call_operand.vmem [shape: f32[1,16], index: 2, kind: input, shape index: {}]   ;;  %s1681_s3 = inlined_call_operand.vmem [shape: f32[56,16], index: 3, kind: output, shape index: {}]  }
   0x1   :  { %s1438_s14 = smov 0  }
   0x2 LB: > { %s1447_s15 = sadd.s32 4294967295, %s1380_s14   ;;  %s1449_s16 = sadd.s32 1, %s1380_s14   ;;  %s1380_s14 = sphi %s1438_s14, %s1685_s14   ;;  %s1376_s13 = sphi %s1436_s13, %s1684_s13   ;;  %s1372_s12 = sphi %s1434_s12, %s1683_s12  }
   0x3   : > { %s85_s17 = ssub.s32 %s1380_s14, %s1449_s16  ;;  %s88_s18 = sadd.s32 1, %s1376_s13 }
   0x4   : > { %p86_p0 = scmp.eq.s32.totalorder %s85_s17, 0  ;;  %p98_p1 = scmp.ne.s32.totalorder %s1376_s13, %s1372_s12 }
   0x5   : > { %p99_p2 = scmp.eq.s32.totalorder %s1447_s15, 3  ;;  %p938_p3 = scmp.ge.s32.totalorder %s1380_s14, 1 }
   0x6   : > { %s1457_s19 = scalar_select %p86_p0, %s1376_s13, %s88_s18  }
   0x7   : > { %p1459_p4 = por %p99_p2, %p98_p1  ;;  %p149_p5 = scmp.lt.s32.totalorder %s1380_s14, 5 }
   0x9   : > { %p150_p6 = pnand %p938_p3, %p149_p5 }
   0xa   : > { %s1500_s24 = sshll.u32 (!%p150_p6), %s1447_s15, 1 }
   0xb   : > { %153 = sbr.rel (%p150_p6) target bundleno = 267 (0x10b), region = 32  ;;  %p184_p7 = scmp.lt.s32.totalorder (!%p150_p6), %s1500_s24, 6 }
  0x10   : > { %v1188_v0 = vld [vmem:[%s1679_s1 + $0x38] sm:$0xff]  ;;  %v1187_v4 = vld [vmem:[%s1679_s1 + $0x30] sm:$0xff]  ;;  %v1186_v8 = vld [vmem:[%s1679_s1 + $0x28] sm:$0xff]  ;;  %s185_s18 = scalar_select %p184_p7, %s1500_s24, 6  ;;  %vm712_vm0 = vcmask 130048  }
  0x11   : > { %v1196_v1 = vld [vmem:[%s1679_s1 + $0x78] sm:$0xff]  ;;  %624 = vmatpush.bf16.msra.mxu0 %v1188_v0  ;;  %v1195_v5 = vld [vmem:[%s1679_s1 + $0x70] sm:$0xff]  ;;  %v1194_v9 = vld [vmem:[%s1679_s1 + $0x68] sm:$0xff]  ;;  %s1229_s28 = sshll.u32 (%p1459_p4), %s1447_s15, 4 }
  0x12   : > { %v1204_v2 = vld [vmem:[%s1679_s1 + $0xb8] sm:$0xff]  ;;  %638 = vmatpush.bf16.msra.mxu1 %v1196_v1  ;;  %v1203_v6 = vld [vmem:[%s1679_s1 + $0xb0] sm:$0xff]  ;;  %v1202_v10 = vld [vmem:[%s1679_s1 + $0xa8] sm:$0xff]  ;;  %s1232_s30 = smul.u32 24, %s185_s18  ;;  %s1644_s4 = scalar_lea.vmem (%p1459_p4), %s1681_s3, %s1229_s28  }
  0x13   : > { %v1212_v3 = vld [vmem:[%s1679_s1 + $0xf8] sm:$0xff]  ;;  %652 = vmatpush.bf16.msra.mxu2 %v1204_v2  ;;  %v1211_v7 = vld [vmem:[%s1679_s1 + $0xf0] sm:$0xff]  ;;  %v1210_v11 = vld [vmem:[%s1679_s1 + $0xe8] sm:$0xff] }
  0x14   : > { %666 = vmatpush.bf16.msra.mxu3 %v1212_v3  ;;  %v1185_v12 = vld [vmem:[%s1679_s1 + $0x20] sm:$0xff]  ;;  %v1184_v16 = vld [vmem:[%s1679_s1 + $0x18] sm:$0xff]  ;;  %v1183_v20 = vld [vmem:[%s1679_s1 + $0x10] sm:$0xff]  ;;  %s1555_s18 = scalar_lea.vmem %s1678_s0, %s1232_s30 }
  0x15   : > { %625 = vmatpush.bf16.msra.mxu0 %v1187_v4  ;;  %v1193_v13 = vld [vmem:[%s1679_s1 + $0x60] sm:$0xff]  ;;  %v1192_v17 = vld [vmem:[%s1679_s1 + $0x58] sm:$0xff]  ;;  %v1191_v21 = vld [vmem:[%s1679_s1 + $0x50] sm:$0xff] }
  0x16   : > { %639 = vmatpush.bf16.msra.mxu1 %v1195_v5  ;;  %v1201_v14 = vld [vmem:[%s1679_s1 + $0xa0] sm:$0xff]  ;;  %v1200_v18 = vld [vmem:[%s1679_s1 + $0x98] sm:$0xff]  ;;  %v1199_v22 = vld [vmem:[%s1679_s1 + $0x90] sm:$0xff] }
  0x17   : > { %653 = vmatpush.bf16.msra.mxu2 %v1203_v6  ;;  %v1209_v15 = vld [vmem:[%s1679_s1 + $0xe0] sm:$0xff]  ;;  %v1208_v19 = vld [vmem:[%s1679_s1 + $0xd8] sm:$0xff]  ;;  %v1207_v23 = vld [vmem:[%s1679_s1 + $0xd0] sm:$0xff] }
  0x18   : > { %667 = vmatpush.bf16.msra.mxu3 %v1211_v7  ;;  %v1182_v24 = vld [vmem:[%s1679_s1 + $0x8] sm:$0xff]  ;;  %v1181_v28 = vld [vmem:[%s1679_s1] sm:$0xff]  ;;  %v1178_v31 = vld [vmem:[%s1555_s18 + $0x14] sm:$0xf0] }
  0x19   : > { %626 = vmatpush.bf16.msra.mxu0 %v1186_v8  ;;  %v1190_v25 = vld [vmem:[%s1679_s1 + $0x48] sm:$0xff]  ;;  %v1189_v29 = vld [vmem:[%s1679_s1 + $0x40] sm:$0xff]  ;;  %v946_v33 = vld [vmem:[%s1555_s18 + $0x18] sm:$0xf0] }
  0x1a   : > { %640 = vmatpush.bf16.msra.mxu1 %v1194_v9  ;;  %v1198_v26 = vld [vmem:[%s1679_s1 + $0x88] sm:$0xff]  ;;  %v944_v30 = vld [vmem:[%s1555_s18] sm:$0xf]  ;;  %v1175_v32 = vld [vmem:[%s1555_s18 + $0x4] sm:$0xf] }
  0x1b   : > { %654 = vmatpush.bf16.msra.mxu2 %v1202_v10  ;;  %v1206_v27 = vld [vmem:[%s1679_s1 + $0xc8] sm:$0xff]  ;;  %v1220_v34 = vld [vmem:[%s1679_s1 + $0x138] sm:$0xff]  ;;  %v1197_v36 = vld [vmem:[%s1679_s1 + $0x80] sm:$0xff]  ;;  %v945_v40 = vor.u32 %v1178_v31, %v944_v30  ;;  %v949_v43 = vor.u32 %v1175_v32, %v946_v33 }
  0x1c   : > { %668 = vmatpush.bf16.msra.mxu3 %v1210_v11  ;;  %v1228_v35 = vld [vmem:[%s1679_s1 + $0x178] sm:$0xff]  ;;  %v1205_v37 = vld [vmem:[%s1679_s1 + $0xc0] sm:$0xff]  ;;  %v952_v38 = vld [vmem:[%s1555_s18 + $0x8] sm:$0xf] }
  0x1d   : > { %627 = vmatpush.bf16.msra.mxu0 %v1185_v12  ;;  %v1179_v39 = vld [vmem:[%s1555_s18 + $0x1c] sm:$0xf0]  ;;  %v1176_v41 = vld [vmem:[%s1555_s18 + $0xc] sm:$0xf]  ;;  %v954_v42 = vld [vmem:[%s1555_s18 + $0x20] sm:$0xf0] }
  0x1e   : > { %641 = vmatpush.bf16.msra.mxu1 %v1193_v13  ;;  %v1219_v44 = vld [vmem:[%s1679_s1 + $0x130] sm:$0xff]  ;;  %v953_v46 = vor.u32 %v1179_v39, %v952_v38  ;;  %v957_v47 = vor.u32 %v1176_v41, %v954_v42  ;;  %v1218_v48 = vld [vmem:[%s1679_s1 + $0x128] sm:$0xff]  ;;  %v1217_v50 = vld [vmem:[%s1679_s1 + $0x120] sm:$0xff] }
  0x1f   : > { %655 = vmatpush.bf16.msra.mxu2 %v1201_v14  ;;  %v1227_v45 = vld [vmem:[%s1679_s1 + $0x170] sm:$0xff]  ;;  %v1226_v49 = vld [vmem:[%s1679_s1 + $0x168] sm:$0xff]  ;;  %v1225_v51 = vld [vmem:[%s1679_s1 + $0x160] sm:$0xff] }
  0x20   : > { %669 = vmatpush.bf16.msra.mxu3 %v1209_v15  ;;  %v1216_v52 = vld [vmem:[%s1679_s1 + $0x118] sm:$0xff]  ;;  %v1215_v54 = vld [vmem:[%s1679_s1 + $0x110] sm:$0xff]  ;;  %v1214_v56 = vld [vmem:[%s1679_s1 + $0x108] sm:$0xff] }
  0x21   : > { %628 = vmatpush.bf16.msra.mxu0 %v1184_v16  ;;  %v1224_v53 = vld [vmem:[%s1679_s1 + $0x158] sm:$0xff]  ;;  %v1223_v55 = vld [vmem:[%s1679_s1 + $0x150] sm:$0xff]  ;;  %v1222_v57 = vld [vmem:[%s1679_s1 + $0x148] sm:$0xff] }
  0x22   : > { %642 = vmatpush.bf16.msra.mxu1 %v1192_v17  ;;  %v1213_v58 = vld [vmem:[%s1679_s1 + $0x100] sm:$0xff]  ;;  %v960_v60 = vld [vmem:[%s1555_s18 + $0x10] sm:$0xf]  ;;  %v1180_v61 = vld [vmem:[%s1555_s18 + $0x24] sm:$0xf0] }
  0x23   : > { %656 = vmatpush.bf16.msra.mxu2 %v1200_v18  ;;  %v1221_v59 = vld [vmem:[%s1679_s1 + $0x140] sm:$0xff]  ;;  %v1177_v62 = vld [vmem:[%s1555_s18 + $0x14] sm:$0xf]  ;;  %v962_v63 = vld [vmem:[%s1555_s18 + $0x28] sm:$0xf0]  ;;  %v961_v0 = vor.u32 %v1180_v61, %v960_v60  ;;  %s175_s18 = sand.u32 1, %s1372_s12  }
  0x24   : > { %670 = vmatpush.bf16.msra.mxu3 %v1208_v19  ;;  %v965_v1 = vor.u32 %v1177_v62, %v962_v63  ;;  %v1321_v4 = vld [vmem:[%s1680_s2] ss:$0 sm:$0xff]  ;;  %s939_s26 = sshll.u32 %s175_s18, 4  ;;  %s723_s12 = ssub.s32 (%p1459_p4), 7, %s1500_s24 }
  0x25   : > { %629 = vmatpush.bf16.msra.mxu0 %v1183_v20  ;;  %s1633_s27 = scalar_lea.vmem [#allocation2], %s939_s26   ;;  %p724_p8 = scmp.lt.s32.totalorder (%p1459_p4), %s723_s12, 2 }
  0x26   : > { %643 = vmatpush.bf16.msra.mxu1 %v1191_v21 }
  0x27   : > { %657 = vmatpush.bf16.msra.mxu2 %v1199_v22 }
  0x28   : > { %671 = vmatpush.bf16.msra.mxu3 %v1207_v23 }
  0x29   : > { %630 = vmatpush.bf16.msra.mxu0 %v1182_v24 }
  0x2a   : > { %644 = vmatpush.bf16.msra.mxu1 %v1190_v25 }
  0x2b   : > { %658 = vmatpush.bf16.msra.mxu2 %v1198_v26 }
  0x2c   : > { %672 = vmatpush.bf16.msra.mxu3 %v1206_v27 }
  0x2d   : > { %631 = vmatpush.bf16.msra.mxu0 %v1181_v28 }
  0x2e   : > { %645 = vmatpush.bf16.msra.mxu1 %v1189_v29 }
  0x2f   : > { %659 = vmatpush.bf16.msra.mxu2 %v1197_v36 }
  0x30   : > { %673 = vmatpush.bf16.msra.mxu3 %v1205_v37  ;;  %632 = vmatmul.bf16.vlgmr.msra.gmra.mxu0 %v945_v40 }
  0x31   : > { %680 = vmatpush.bf16.msrb.mxu0 %v1220_v34  ;;  %646 = vmatmul.bf16.vlgmr.msra.gmra.mxu1 %v949_v43 }
  0x32   : > { %694 = vmatpush.bf16.msrb.mxu1 %v1228_v35  ;;  %660 = vmatmul.bf16.vlgmr.msra.gmra.mxu2 %v953_v46 }
  0x33   : > { %674 = vmatmul.bf16.vlgmr.msra.gmra.mxu3 %v957_v47 }
  0x35   : > { %681 = vmatpush.bf16.msrb.mxu0 %v1219_v44 }
  0x36   : > { %695 = vmatpush.bf16.msrb.mxu1 %v1227_v45 }
  0x39   : > { %682 = vmatpush.bf16.msrb.mxu0 %v1218_v48 }
  0x3a   : > { %696 = vmatpush.bf16.msrb.mxu1 %v1226_v49 }
  0x3d   : > { %683 = vmatpush.bf16.msrb.mxu0 %v1217_v50 }
  0x3e   : > { %697 = vmatpush.bf16.msrb.mxu1 %v1225_v51 }
  0x41   : > { %684 = vmatpush.bf16.msrb.mxu0 %v1216_v52 }
  0x42   : > { %698 = vmatpush.bf16.msrb.mxu1 %v1224_v53 }
  0x45   : > { %685 = vmatpush.bf16.msrb.mxu0 %v1215_v54 }
  0x46   : > { %699 = vmatpush.bf16.msrb.mxu1 %v1223_v55 }
  0x49   : > { %686 = vmatpush.bf16.msrb.mxu0 %v1214_v56 }
  0x4a   : > { %700 = vmatpush.bf16.msrb.mxu1 %v1222_v57 }
  0x4d   : > { %687 = vmatpush.bf16.msrb.mxu0 %v1213_v58 }
  0x4e   : > { %701 = vmatpush.bf16.msrb.mxu1 %v1221_v59 }
  0x50   : > { %688 = vmatmul.bf16.vlgmr.msrb.gmra.mxu0 %v961_v0 }
  0x51   : > { %702 = vmatmul.bf16.vlgmr.msrb.gmra.mxu1 %v965_v1 }
  0xad   : > { %v633_v2 = vpop.f32.mrf.mxu0 }
  0xae   : > { %v647_v3 = vpop.f32.mrf.mxu1  ;;  %v634_v5 = vadd.f32 %v1321_v4, %v633_v2 }
  0xb0   : > { %v648_v7 = vadd.f32 %v647_v3, %v634_v5 }
  0xb5   : > { %v661_v6 = vpop.f32.mrf.mxu2  ;;  %v635_v8 = vpop.f32.mrf.mxu0 }
  0xb6   : > { %v649_v9 = vpop.f32.mrf.mxu1  ;;  %v675_v10 = vpop.f32.mrf.mxu3  ;;  %v662_v11 = vadd.f32 %v661_v6, %v648_v7  ;;  %v636_v12 = vadd.f32 %v1321_v4, %v635_v8 }
  0xb8   : > { %v676_v13 = vadd.f32 %v675_v10, %v662_v11  ;;  %v650_v14 = vadd.f32 %v649_v9, %v636_v12 }
  0xbd   : > { %v663_v15 = vpop.f32.mrf.mxu2 }
  0xbe   : > { %v664_v19 = vadd.f32 %v663_v15, %v650_v14  ;;  %v677_v21 = vpop.f32.mrf.mxu3 }
  0xc0   : > { %v678_v22 = vadd.f32 %v677_v21, %v664_v19 }
  0xcd   : > { %v689_v16 = vpop.f32.mrf.mxu0 }
  0xce   : > { %v703_v17 = vpop.f32.mrf.mxu1  ;;  %v690_v18 = vadd.f32 %v689_v16, %v676_v13 }
  0xd0   : > { %v704_v20 = vadd.f32 %v703_v17, %v690_v18 }
  0xd2   : > { %1322 = vtanh.f32 %v704_v20 }
  0xd5   : > { %v691_v23 = vpop.f32.mrf.mxu0 }
  0xd6   : > { %v692_v24 = vadd.f32 %v691_v23, %v678_v22  ;;  %v705_v25 = vpop.f32.mrf.mxu1 }
  0xd8   : > { %v1323_v26 = vpop.eup %1322  ;;  %v706_v27 = vadd.f32 %v705_v25, %v692_v24 }
  0xd9   : > { %v710_v28 = vmul.f32 1.5707964, %v1323_v26 }
  0xda   : > { %1324 = vtanh.f32 %v706_v27 }
  0xdb   : > { %713 = vst.msk [vmem:[%s1633_s27] sm:$0xff] %vm712_vm0, %v710_v28 }
  0xdf   : > { %721 = sbr.rel (!%p1459_p4) target bundleno = 267 (0x10b), region = 36 }
  0xe0   : > { %v1325_v29 = vpop.eup %1324 }
  0xe1   : > { %v711_v30 = vmul.f32 1.5707964, %v1325_v29 }
  0xe3   : > { %714 = vst.msk [vmem:[%s1633_s27 + $0x8] sm:$0xff] %vm712_vm0, %v711_v30 }
  0xe4   : > { %s1687_s12 = smov (!%p724_p8, %s723_s12), 2 }
  0xe5   : > { %s1160_s5 = sshll.u32 %s1687_s12, 3 }
  0xe6   : > { %p1163_p9 = scmp.eq.s32.totalorder %s1160_s5, 0 }
  0xe7   : > { %s1650_s6 = sshrl.u32 (!%p1163_p9), %s1687_s12, 1 }
  0xe8   : > { %732 = sbr.rel (%p1163_p9) target bundleno = 267 (0x10b), region = 40  ;;  %p1164_p10 = scmp.le.s32.totalorder (!%p1163_p9), %s1650_s6, 0 }
  0xed   : > { %891 = sbr.rel (%p1164_p10) target bundleno = 250 (0xfa), region = 116  ;;  %s1382_s15 = smov (!%p1164_p10), %s1644_s4  }
  0xee   : > { %s1386_s20 = smov (!%p1164_p10), %s1633_s27   ;;  %s1390_s24 = smov (!%p1164_p10), 0  }
  0xef   : > { %s1394_s7 = smov (!%p1164_p10), 0  }
  0xf2 LB: >> { %v797_v31 = vld [vmem:[%s1388_s20] sm:$0xff]  ;;  %v799_v32 = vld [vmem:[%s1388_s20 + $0x8] sm:$0xff]  ;;  %s801_s8 = sadd.s32 1, %s1392_s24  ;;  %s791_s7 = sadd.s32 1, %s1396_s7   ;;  %s1396_s7 = sphi %s1394_s7, %s791_s7   ;;  %s1392_s24 = sphi %s1390_s24, %s1391_s24   ;;  %s1388_s20 = sphi %s1386_s20, %s806_s20   ;;  %s1384_s15 = sphi %s1382_s15, %s807_s15  }
  0xf3   : >> { %798 = vst [vmem:[%s1384_s15] sm:$0xff] %v797_v31  ;;  %p802_p11 = scmp.ge.s32.totalorder %s801_s8, %s1650_s6  ;;  %p790_p12 = scmp.ge.s32.totalorder %s791_s7, %s1650_s6 }
  0xf4   : >> { %800 = vst [vmem:[%s1384_s15 + $0x8] sm:$0xff] %v799_v32 }
  0xf5   : >> { %s1689_s8 = smov (%p802_p11, %s801_s8), 0  ;;  %793 = sbr.rel (!%p790_p12) target bundleno = 242 (0xf2), region = 122 }
  0xf6   : >> { %s1165_s9 = sshll.u32 %s1689_s8, 4  ;;  %s1391_s24 = smov %s1689_s8  }
  0xf7   : >> { %s806_s20 = scalar_lea.vmem %s1633_s27, %s1165_s9 [#allocation2]   ;;  %s807_s15 = scalar_lea.vmem %s1644_s4, %s1165_s9  }
  0xfa PF: > { %s1660_s10 = sand.u32 1, %s1687_s12   ;;  %s1230_s11 = sshll.u32 %s1650_s6, 4 }
  0xfb   : > { %s812_s14 = scalar_lea.vmem %s1633_s27, %s1230_s11 [#allocation2]   ;;  %s814_s17 = scalar_lea.vmem %s1644_s4, %s1230_s11  }
  0xfc   : > { %p1170_p13 = scmp.le.s32.totalorder %s1660_s10, 0 }
  0xfd   : > { %s1398_s21 = smov (!%p1170_p13), %s814_s17   ;;  %s1402_s22 = smov (!%p1170_p13), %s812_s14  }
  0xfe   : > { %905 = sbr.rel (%p1170_p13) target bundleno = 267 (0x10b), region = 127  ;;  %s1406_s23 = smov (!%p1170_p13), 0  }
  0xff   : > { %s1410_s25 = smov (!%p1170_p13), 0  }
 0x103 LB: >> { %v824_v33 = vld [vmem:[%s1404_s22] sm:$0xff]  ;;  %s826_s18 = sadd.s32 1, %s1408_s23  ;;  %s818_s25 = sadd.s32 1, %s1412_s25   ;;  %s1412_s25 = sphi %s1410_s25, %s818_s25   ;;  %s1408_s23 = sphi %s1406_s23, %s1407_s23   ;;  %s1404_s22 = sphi %s1402_s22, %s831_s22   ;;  %s1400_s21 = sphi %s1398_s21, %s832_s21  }
 0x104   : >> { %825 = vst [vmem:[%s1400_s21] sm:$0xff] %v824_v33  ;;  %p827_p0 = scmp.ge.s32.totalorder %s826_s18, %s1660_s10  ;;  %p817_p1 = scmp.ge.s32.totalorder %s818_s25, %s1660_s10 }
 0x106   : >> { %s1691_s18 = smov (%p827_p0, %s826_s18), 0  ;;  %820 = sbr.rel (!%p817_p1) target bundleno = 259 (0x103), region = 133 }
 0x107   : >> { %s1171_s26 = sshll.u32 %s1691_s18, 3  ;;  %s1407_s23 = smov %s1691_s18  }
 0x108   : >> { %s831_s22 = scalar_lea.vmem %s812_s14, %s1171_s26 [#allocation2]   ;;  %s832_s21 = scalar_lea.vmem %s814_s17, %s1171_s26  }
 0x10b PF: > { %p10_p2 = scmp.ge.s32.totalorder %s1449_s16, 6   ;;  %s1683_s12 = smov %s1376_s13 }
 0x10c   : > { %s1684_s13 = smov %s1457_s19  ;;  %s1685_s14 = smov %s1449_s16 }
 0x10d   :  { %12 = sbr.rel (!%p10_p2) target bundleno = 2 (0x2), region = 144 }

</bundles_post_ra>
